<compile_context>
chip_gen: v5e
topology: v5e:2x2
jax: 0.10.0
libtpu: 0.0.40
codegen_flags: <defaults>
</compile_context>

<pallas_src>
import jax
import jax.numpy as jnp
from jax.experimental import pallas as pl
from jax.experimental.pallas import tpu as pltpu

IN_FEATURES = 8
OUT_FEATURES = 8
PACK = 16                        # 16 rows of 8 features -> one 128-lane packed row
LANES = PACK * IN_FEATURES       # 128

_MIN_PALLAS_ROWS = 1024          # below this: pure launch overhead -> fused XLA
_MAX_PACKED_TB = 4096            # 4096 packed rows * 512 B = 2 MiB per in/out tile
_VMEM_LIMIT = 32 * 1024 * 1024   # ~9 MiB worst-case footprint; fits all generations


def _fused_linear_relu_kernel(x_ref, w_ref, b_ref, o_ref):
    # One lane-dense batch tile:
    #   x_ref: (TB, 128)   16 original (B, 8) rows packed per sublane row
    #   w_ref: (128, 128)  block-diagonal fused weight (16 copies of Wf)
    #   b_ref: (1, 128)    fused bias, tiled 16x
    y = jnp.dot(x_ref[...], w_ref[...], preferred_element_type=jnp.float32)
    o_ref[...] = jnp.maximum(y + b_ref[...], 0.0).astype(o_ref.dtype)


def mymodel_forward(x, w1, b1, w2, b2, *, max_packed_tile=_MAX_PACKED_TB):
    """ReLU(fc1(x) + fc2(x)) == ReLU(x @ (W1+W2).T + (b1+b2))."""
    B, F = x.shape
    assert F == IN_FEATURES
    assert max_packed_tile % 8 == 0
    orig_dtype = x.dtype

    # Algebraic fusion. NOTE: summing W1+W2 before the matmul is not
    # bit-identical to summing two separate matmuls, but is well within f32
    # tolerance for 8-wide dot products.
    wf = (w1 + w2).T.astype(jnp.float32)            # (in, out) = (8, 8)
    bf = (b1 + b2).astype(jnp.float32)              # (8,)

    if B < _MIN_PALLAS_ROWS:
        # Tiny batch: launch-overhead regime -> plain fused XLA expression.
        y = jnp.maximum(x.astype(jnp.float32) @ wf + bf, 0.0)
        return y.astype(orig_dtype)

    xf = x.astype(jnp.float32)
    # Lane-dense repack: pad only to the 16-row multiple the reshape needs
    # (NOT to a full tile multiple). Partial last grid blocks are handled by
    # Pallas, so no extra full HBM copy for non-tile-aligned batches.
    b16 = pl.cdiv(B, PACK) * PACK
    if b16 != B:
        xf = jnp.pad(xf, ((0, b16 - B), (0, 0)))
    xp = xf.reshape(b16 // PACK, LANES)             # free, contiguous reshape

    # 128x128 block-diagonal fused weight + tiled bias, built once in HBM.
    w_big = jnp.kron(jnp.eye(PACK, dtype=jnp.float32), wf)   # (128, 128)
    b_big = jnp.tile(bf, PACK).reshape(1, LANES)              # (1, 128)

    rows = xp.shape[0]
    if rows <= max_packed_tile:
        tb = rows                                    # single full-extent block
    else:
        tb = max_packed_tile                         # multiple of 8
    grid = (pl.cdiv(rows, tb),)

    cost = pl.CostEstimate(
        flops=2 * rows * LANES * LANES,
        transcendentals=0,
        bytes_accessed=(xp.size + rows * LANES + w_big.size + b_big.size) * 4,
    )

    out_p = pl.pallas_call(
        _fused_linear_relu_kernel,
        out_shape=jax.ShapeDtypeStruct((rows, LANES), jnp.float32),
        grid=grid,
        in_specs=[
            pl.BlockSpec((tb, LANES), lambda i: (i, 0)),      # x tile (pipelined)
            pl.BlockSpec((LANES, LANES), lambda i: (0, 0)),   # W  (VMEM-resident)
            pl.BlockSpec((1, LANES), lambda i: (0, 0)),       # b  (VMEM-resident)
        ],
        out_specs=pl.BlockSpec((tb, LANES), lambda i: (i, 0)),
        compiler_params=pltpu.CompilerParams(
            dimension_semantics=("parallel",),
            vmem_limit_bytes=_VMEM_LIMIT,
        ),
        cost_estimate=cost,
    )(xp, w_big, b_big)

    y = out_p.reshape(b16, OUT_FEATURES)             # free reshape back
    if b16 != B:
        y = y[:B]
    return y.astype(orig_dtype)


def init_params(key):
    # Deterministic init mimicking torch.nn.Linear default:
    # U(-1/sqrt(in_features), 1/sqrt(in_features)) for weight and bias.
    k1, k2, k3, k4 = jax.random.split(key, 4)
    bound = 1.0 / jnp.sqrt(float(IN_FEATURES))
    w1 = jax.random.uniform(k1, (OUT_FEATURES, IN_FEATURES),
                            jnp.float32, -bound, bound)
    b1 = jax.random.uniform(k2, (OUT_FEATURES,), jnp.float32, -bound, bound)
    w2 = jax.random.uniform(k3, (OUT_FEATURES, IN_FEATURES),
                            jnp.float32, -bound, bound)
    b2 = jax.random.uniform(k4, (OUT_FEATURES,), jnp.float32, -bound, bound)
    return w1, b1, w2, b2


def _reference(x, w1, b1, w2, b2):
    return jnp.maximum((x @ w1.T + b1) + (x @ w2.T + b2), 0.0)


if __name__ == "__main__":
    key = jax.random.PRNGKey(0)
    k_params, k1, k2, k3 = jax.random.split(key, 4)
    w1, b1, w2, b2 = init_params(k_params)

    # (1) Pallas path: 16-aligned batch, single lane-dense tile.
    x1 = jax.random.normal(k1, (4096, IN_FEATURES), dtype=jnp.float32)
    o1 = jax.block_until_ready(mymodel_forward(x1, w1, b1, w2, b2))
    assert o1.shape == (4096, OUT_FEATURES)
    assert jnp.allclose(o1, _reference(x1, w1, b1, w2, b2), atol=1e-5, rtol=1e-5)

    # (2) Pallas path: multi-tile grid with a partial last block (small tile
    #     forced so the boundary path is exercised at small shapes).
    x2 = jax.random.normal(k2, (2000, IN_FEATURES), dtype=jnp.float32)
    o2 = jax.block_until_ready(
        mymodel_forward(x2, w1, b1, w2, b2, max_packed_tile=64))
    assert o2.shape == (2000, OUT_FEATURES)
    assert jnp.allclose(o2, _reference(x2, w1, b1, w2, b2), atol=1e-5, rtol=1e-5)

    # (3) Tiny batch: fused-XLA fallback (launch-overhead regime).
    x3 = jax.random.normal(k3, (8, IN_FEATURES), dtype=jnp.float32)
    o3 = jax.block_until_ready(mymodel_forward(x3, w1, b1, w2, b2))
    assert o3.shape == (8, OUT_FEATURES)
    assert jnp.allclose(o3, _reference(x3, w1, b1, w2, b2), atol=1e-5, rtol=1e-5)

    print("KERNEL_OK")
</pallas_src>

<mosaic_0001>
module attributes {stable_mosaic.version = 11 : i64} {
  func.func @_fused_linear_relu_kernel(%arg0: i32, %arg1: memref<256x128xf32, #tpu.memory_space<vmem>>, %arg2: memref<128x128xf32, #tpu.memory_space<vmem>>, %arg3: memref<1x128xf32, #tpu.memory_space<vmem>>, %arg4: memref<256x128xf32, #tpu.memory_space<vmem>>) attributes {dimension_semantics = [#tpu.dimension_semantics<parallel>], iteration_bounds = array<i64: 1>, scalar_prefetch = 0 : i64, scratch_operands = 0 : i64, tpu.core_type = #tpu.core_type<tc>, window_params = [{transform_indices = @transform_0, window_bounds = array<i64: 256, 128>}, {pipeline_mode = #tpu.pipeline_mode<synchronous>, transform_indices = @transform_1, window_bounds = array<i64: 128, 128>}, {pipeline_mode = #tpu.pipeline_mode<synchronous>, transform_indices = @transform_2, window_bounds = array<i64: 1, 128>}, {transform_indices = @transform_3, window_bounds = array<i64: 256, 128>}]} {
    %c0 = arith.constant 0 : index
    %c0_0 = arith.constant 0 : index
    %0 = vector.load %arg1[%c0, %c0_0] : memref<256x128xf32, #tpu.memory_space<vmem>>, vector<256x128xf32>
    %c0_1 = arith.constant 0 : index
    %c0_2 = arith.constant 0 : index
    %1 = vector.load %arg2[%c0_1, %c0_2] : memref<128x128xf32, #tpu.memory_space<vmem>>, vector<128x128xf32>
    %cst = arith.constant dense<0.000000e+00> : vector<256x128xf32>
    %2 = tpu.matmul %0, %1, %cst {dimension_numbers = #tpu.dot_dimension_numbers<[1], [0], [0], [1], [0, 0, 1, 1], [], []>} : vector<256x128xf32>, vector<128x128xf32>, vector<256x128xf32> -> vector<256x128xf32>
    %c0_3 = arith.constant 0 : index
    %c0_4 = arith.constant 0 : index
    %3 = vector.load %arg3[%c0_3, %c0_4] : memref<1x128xf32, #tpu.memory_space<vmem>>, vector<1x128xf32>
    %4 = vector.broadcast %3 : vector<1x128xf32> to vector<256x128xf32>
    %5 = arith.addf %2, %4 : vector<256x128xf32>
    %cst_5 = arith.constant 0.000000e+00 : f32
    %6 = vector.broadcast %cst_5 : f32 to vector<256x128xf32>
    %7 = arith.maximumf %5, %6 : vector<256x128xf32>
    %c0_6 = arith.constant 0 : index
    %c0_7 = arith.constant 0 : index
    %8 = vector.load %arg4[%c0_6, %c0_7] : memref<256x128xf32, #tpu.memory_space<vmem>>, vector<256x128xf32>
    tpu.vector_store %arg4[%c0_6, %c0_7], %7 {strides = array<i32>} : memref<256x128xf32, #tpu.memory_space<vmem>>, vector<256x128xf32>,
    return
  }
  func.func @transform_0(%arg0: i32) -> (i32, i32) {
    %c0_i32 = arith.constant 0 : i32
    %c0_i32_0 = arith.constant 0 : i32
    return %arg0, %c0_i32 : i32, i32
  }
  func.func @transform_1(%arg0: i32) -> (i32, i32) {
    %c0_i32 = arith.constant 0 : i32
    %c0_i32_0 = arith.constant 0 : i32
    %c0_i32_1 = arith.constant 0 : i32
    return %c0_i32, %c0_i32_0 : i32, i32
  }
  func.func @transform_2(%arg0: i32) -> (i32, i32) {
    %c0_i32 = arith.constant 0 : i32
    %c0_i32_0 = arith.constant 0 : i32
    %c0_i32_1 = arith.constant 0 : i32
    return %c0_i32, %c0_i32_0 : i32, i32
  }
  func.func @transform_3(%arg0: i32) -> (i32, i32) {
    %c0_i32 = arith.constant 0 : i32
    %c0_i32_0 = arith.constant 0 : i32
    return %arg0, %c0_i32 : i32, i32
  }
}

</mosaic_0001>

<bundles_post_ra>
// kernel: tpu_custom_call.1
= control target key start
LH: loop header
LB: loop body
LE: loop exit
PB: predicated region body
PF: predicated region fallthrough
CT: control target
= control target key end

     0   :  { %8 = vsyncpa [#allocation3], 0  ;;  %s508_s0 = inlined_call_operand.hbm [shape: f32[256,128], index: 0, kind: input, shape index: {}]   ;;  %s509_s1 = inlined_call_operand.hbm [shape: f32[128,128], index: 1, kind: input, shape index: {}]   ;;  %s510_s2 = inlined_call_operand.vmem [shape: f32[1,128], index: 2, kind: input, shape index: {}]   ;;  %s511_s3 = inlined_call_operand.hbm [shape: f32[256,128], index: 3, kind: output, shape index: {}]  }
   0x1   :  { %9 = vsyncpa [#allocation6], 0 }
   0x2   :  { %10 = vsyncpa [#allocation4], 0  ;;  %s15_s14 = sshll.u32 %s508_s0, 4  ;;  %s428_s15 = smov [#allocation2]   ;;  %s16_s14 = int_to_ptr.hbm [resolvable:$true] %s15_s14 }
   0x3   :  { %s17_s16 = sshll.u32 %s428_s15, 4  ;;  %s28_s19 = sshll.u32 %s509_s1, 4  ;;  %s18_s16 = int_to_ptr.vmem [resolvable:$true] %s17_s16  ;;  %s29_s19 = int_to_ptr.hbm [resolvable:$true] %s28_s19 }
   0x4   :  { %s429_s20 = smov 128   ;;  %s430_s21 = smov 8  }
   0x5   :  { %23 = dma.hbm_to_vmem [thread:$0]  %s16_s14, 4096, %s18_s16, [#allocation3], %s429_s20, %s429_s20, %s430_s21  }
   0x6   :  { %s431_s22 = smov [#allocation5]  }
   0x7   :  { %s30_s23 = sshll.u32 %s431_s22, 4  ;;  %s31_s23 = int_to_ptr.vmem [resolvable:$true] %s30_s23 }
   0x8   :  { %36 = dma.hbm_to_vmem [thread:$0]  %s29_s19, 2048, %s31_s23, [#allocation6], %s429_s20, %s429_s20, %s430_s21  }
   0x9   :  { %422 = dma.done.wait [#allocation3], 4096  }
   0xa   :  { %423 = vsyncadd [#allocation3], 4294963200 }
   0xb   :  { %424 = dma.done.wait [#allocation6], 2048  }
   0xc   :  { %425 = vsyncadd [#allocation6], 4294965248  ;;  %v94_v0 = vld [vmem:[#allocation5 + $0x78] sm:$0xff]  ;;  %v93_v1 = vld [vmem:[#allocation5 + $0x70] sm:$0xff]  ;;  %s282_s27 = sshll.u32 %s511_s3, 4  ;;  %s283_s27 = int_to_ptr.hbm [resolvable:$true] %s282_s27 }
   0xd   :  { %297 = vmatpush.msra.mxu2 %v94_v0  ;;  %298 = vmatpush.msra.mxu3 %v94_v0  ;;  %v92_v2 = vld [vmem:[#allocation5 + $0x68] sm:$0xff]  ;;  %v91_v3 = vld [vmem:[#allocation5 + $0x60] sm:$0xff]  ;;  %v90_v4 = vld [vmem:[#allocation5 + $0x58] sm:$0xff] }
   0xe   :  { %99 = vmatpush.msra.mxu0 %v94_v0  ;;  %296 = vmatpush.msra.mxu1 %v94_v0  ;;  %v89_v5 = vld [vmem:[#allocation5 + $0x50] sm:$0xff]  ;;  %v88_v6 = vld [vmem:[#allocation5 + $0x48] sm:$0xff]  ;;  %v87_v7 = vld [vmem:[#allocation5 + $0x40] sm:$0xff] }
   0xf   :  { %300 = vmatpush.msra.mxu2 %v93_v1  ;;  %301 = vmatpush.msra.mxu3 %v93_v1  ;;  %v86_v8 = vld [vmem:[#allocation5 + $0x38] sm:$0xff]  ;;  %v85_v9 = vld [vmem:[#allocation5 + $0x30] sm:$0xff]  ;;  %v84_v10 = vld [vmem:[#allocation5 + $0x28] sm:$0xff] }
  0x10   :  { %100 = vmatpush.msra.mxu0 %v93_v1  ;;  %299 = vmatpush.msra.mxu1 %v93_v1  ;;  %v83_v11 = vld [vmem:[#allocation5 + $0x20] sm:$0xff]  ;;  %v82_v12 = vld [vmem:[#allocation5 + $0x18] sm:$0xff]  ;;  %v81_v13 = vld [vmem:[#allocation5 + $0x10] sm:$0xff] }
  0x11   :  { %303 = vmatpush.msra.mxu2 %v92_v2  ;;  %304 = vmatpush.msra.mxu3 %v92_v2  ;;  %v80_v14 = vld [vmem:[#allocation5 + $0x8] sm:$0xff]  ;;  %v79_v15 = vld [vmem:[#allocation5] sm:$0xff]  ;;  %v65_v24 = vld [vmem:[#allocation2 + $0x90] sm:$0xff] }
  0x12   :  { %101 = vmatpush.msra.mxu0 %v92_v2  ;;  %302 = vmatpush.msra.mxu1 %v92_v2  ;;  %v63_v16 = vld [vmem:[#allocation2 + $0x80] sm:$0xff]  ;;  %v64_v20 = vld [vmem:[#allocation2 + $0x88] sm:$0xff]  ;;  %v73_v25 = vld [vmem:[#allocation2 + $0xd0] sm:$0xff] }
  0x13   :  { %306 = vmatpush.msra.mxu2 %v91_v3  ;;  %307 = vmatpush.msra.mxu3 %v91_v3  ;;  %v71_v17 = vld [vmem:[#allocation2 + $0xc0] sm:$0xff]  ;;  %v72_v21 = vld [vmem:[#allocation2 + $0xc8] sm:$0xff]  ;;  %v49_v26 = vld [vmem:[#allocation2 + $0x10] sm:$0xff] }
  0x14   :  { %102 = vmatpush.msra.mxu0 %v91_v3  ;;  %305 = vmatpush.msra.mxu1 %v91_v3  ;;  %v47_v18 = vld [vmem:[#allocation2] sm:$0xff]  ;;  %v48_v22 = vld [vmem:[#allocation2 + $0x8] sm:$0xff]  ;;  %v57_v27 = vld [vmem:[#allocation2 + $0x50] sm:$0xff] }
  0x15   :  { %309 = vmatpush.msra.mxu2 %v90_v4  ;;  %310 = vmatpush.msra.mxu3 %v90_v4  ;;  %v55_v19 = vld [vmem:[#allocation2 + $0x40] sm:$0xff]  ;;  %v56_v23 = vld [vmem:[#allocation2 + $0x48] sm:$0xff]  ;;  %v66_v28 = vld [vmem:[#allocation2 + $0x98] sm:$0xff] }
  0x16   :  { %103 = vmatpush.msra.mxu0 %v90_v4  ;;  %308 = vmatpush.msra.mxu1 %v90_v4  ;;  %v74_v29 = vld [vmem:[#allocation2 + $0xd8] sm:$0xff]  ;;  %v67_v32 = vld [vmem:[#allocation2 + $0xa0] sm:$0xff]  ;;  %v68_v36 = vld [vmem:[#allocation2 + $0xa8] sm:$0xff] }
  0x17   :  { %312 = vmatpush.msra.mxu2 %v89_v5  ;;  %313 = vmatpush.msra.mxu3 %v89_v5  ;;  %v50_v30 = vld [vmem:[#allocation2 + $0x18] sm:$0xff]  ;;  %v75_v33 = vld [vmem:[#allocation2 + $0xe0] sm:$0xff]  ;;  %v76_v37 = vld [vmem:[#allocation2 + $0xe8] sm:$0xff] }
  0x18   :  { %104 = vmatpush.msra.mxu0 %v89_v5  ;;  %311 = vmatpush.msra.mxu1 %v89_v5  ;;  %v58_v31 = vld [vmem:[#allocation2 + $0x58] sm:$0xff]  ;;  %v51_v34 = vld [vmem:[#allocation2 + $0x20] sm:$0xff]  ;;  %v52_v38 = vld [vmem:[#allocation2 + $0x28] sm:$0xff] }
  0x19   :  { %315 = vmatpush.msra.mxu2 %v88_v6  ;;  %316 = vmatpush.msra.mxu3 %v88_v6  ;;  %v59_v35 = vld [vmem:[#allocation2 + $0x60] sm:$0xff]  ;;  %v60_v39 = vld [vmem:[#allocation2 + $0x68] sm:$0xff]  ;;  %v69_v40 = vld [vmem:[#allocation2 + $0xb0] sm:$0xff] }
  0x1a   :  { %105 = vmatpush.msra.mxu0 %v88_v6  ;;  %314 = vmatpush.msra.mxu1 %v88_v6  ;;  %v77_v41 = vld [vmem:[#allocation2 + $0xf0] sm:$0xff]  ;;  %v70_v44 = vld [vmem:[#allocation2 + $0xb8] sm:$0xff]  ;;  %v468_v48 = vld [vmem:[%s510_s2] ss:$0 sm:$0xff]  ;;  %s432_s2 = smov [#allocation7]  }
  0x1b   :  { %318 = vmatpush.msra.mxu2 %v87_v7  ;;  %319 = vmatpush.msra.mxu3 %v87_v7  ;;  %v53_v42 = vld [vmem:[#allocation2 + $0x30] sm:$0xff]  ;;  %v78_v45 = vld [vmem:[#allocation2 + $0xf8] sm:$0xff]  ;;  %s280_s24 = sshll.u32 %s432_s2, 4  ;;  %s281_s24 = int_to_ptr.vmem [resolvable:$true] %s280_s24 }
  0x1c   :  { %106 = vmatpush.msra.mxu0 %v87_v7  ;;  %317 = vmatpush.msra.mxu1 %v87_v7  ;;  %v61_v43 = vld [vmem:[#allocation2 + $0x70] sm:$0xff]  ;;  %v54_v46 = vld [vmem:[#allocation2 + $0x38] sm:$0xff] }
  0x1d   :  { %321 = vmatpush.msra.mxu2 %v86_v8  ;;  %322 = vmatpush.msra.mxu3 %v86_v8  ;;  %v62_v47 = vld [vmem:[#allocation2 + $0x78] sm:$0xff] }
  0x1e   :  { %107 = vmatpush.msra.mxu0 %v86_v8  ;;  %320 = vmatpush.msra.mxu1 %v86_v8 }
  0x1f   :  { %324 = vmatpush.msra.mxu2 %v85_v9  ;;  %325 = vmatpush.msra.mxu3 %v85_v9 }
  0x20   :  { %108 = vmatpush.msra.mxu0 %v85_v9  ;;  %323 = vmatpush.msra.mxu1 %v85_v9 }
  0x21   :  { %327 = vmatpush.msra.mxu2 %v84_v10  ;;  %328 = vmatpush.msra.mxu3 %v84_v10 }
  0x22   :  { %109 = vmatpush.msra.mxu0 %v84_v10  ;;  %326 = vmatpush.msra.mxu1 %v84_v10 }
  0x23   :  { %330 = vmatpush.msra.mxu2 %v83_v11  ;;  %331 = vmatpush.msra.mxu3 %v83_v11 }
  0x24   :  { %110 = vmatpush.msra.mxu0 %v83_v11  ;;  %329 = vmatpush.msra.mxu1 %v83_v11 }
  0x25   :  { %333 = vmatpush.msra.mxu2 %v82_v12  ;;  %334 = vmatpush.msra.mxu3 %v82_v12 }
  0x26   :  { %111 = vmatpush.msra.mxu0 %v82_v12  ;;  %332 = vmatpush.msra.mxu1 %v82_v12 }
  0x27   :  { %336 = vmatpush.msra.mxu2 %v81_v13  ;;  %337 = vmatpush.msra.mxu3 %v81_v13 }
  0x28   :  { %112 = vmatpush.msra.mxu0 %v81_v13  ;;  %335 = vmatpush.msra.mxu1 %v81_v13 }
  0x29   :  { %339 = vmatpush.msra.mxu2 %v80_v14  ;;  %340 = vmatpush.msra.mxu3 %v80_v14 }
  0x2a   :  { %113 = vmatpush.msra.mxu0 %v80_v14  ;;  %338 = vmatpush.msra.mxu1 %v80_v14 }
  0x2b   :  { %342 = vmatpush.msra.mxu2 %v79_v15  ;;  %343 = vmatpush.msra.mxu3 %v79_v15 }
  0x2c   :  { %163 = vmatmul.f32.vlgmr.msra.gmra.mxu2 %v63_v16  ;;  %187 = vmatmul.f32.vlgmr.msra.gmra.mxu3 %v71_v17 }
  0x2d   :  { %114 = vmatpush.msra.mxu0 %v79_v15  ;;  %341 = vmatpush.msra.mxu1 %v79_v15 }
  0x2e   :  { %115 = vmatmul.f32.vlgmr.msra.gmra.mxu0 %v47_v18  ;;  %139 = vmatmul.f32.vlgmr.msra.gmra.mxu1 %v55_v19 }
  0x34   :  { %166 = vmatmul.f32.gmra.mxu2 %v64_v20  ;;  %190 = vmatmul.f32.gmra.mxu3 %v72_v21 }
  0x36   :  { %118 = vmatmul.f32.gmra.mxu0 %v48_v22  ;;  %142 = vmatmul.f32.gmra.mxu1 %v56_v23 }
  0x3c   :  { %169 = vmatmul.f32.gmra.mxu2 %v65_v24  ;;  %193 = vmatmul.f32.gmra.mxu3 %v73_v25 }
  0x3e   :  { %121 = vmatmul.f32.gmra.mxu0 %v49_v26  ;;  %145 = vmatmul.f32.gmra.mxu1 %v57_v27 }
  0x44   :  { %172 = vmatmul.f32.gmra.mxu2 %v66_v28  ;;  %196 = vmatmul.f32.gmra.mxu3 %v74_v29 }
  0x46   :  { %124 = vmatmul.f32.gmra.mxu0 %v50_v30  ;;  %148 = vmatmul.f32.gmra.mxu1 %v58_v31 }
  0x4c   :  { %175 = vmatmul.f32.gmra.mxu2 %v67_v32  ;;  %199 = vmatmul.f32.gmra.mxu3 %v75_v33 }
  0x4e   :  { %127 = vmatmul.f32.gmra.mxu0 %v51_v34  ;;  %151 = vmatmul.f32.gmra.mxu1 %v59_v35 }
  0x54   :  { %178 = vmatmul.f32.gmra.mxu2 %v68_v36  ;;  %202 = vmatmul.f32.gmra.mxu3 %v76_v37 }
  0x56   :  { %130 = vmatmul.f32.gmra.mxu0 %v52_v38  ;;  %154 = vmatmul.f32.gmra.mxu1 %v60_v39 }
  0x5c   :  { %181 = vmatmul.f32.gmra.mxu2 %v69_v40  ;;  %205 = vmatmul.f32.gmra.mxu3 %v77_v41 }
  0x5e   :  { %133 = vmatmul.f32.gmra.mxu0 %v53_v42  ;;  %157 = vmatmul.f32.gmra.mxu1 %v61_v43 }
  0x64   :  { %184 = vmatmul.f32.gmra.mxu2 %v70_v44  ;;  %208 = vmatmul.f32.gmra.mxu3 %v78_v45 }
  0x66   :  { %136 = vmatmul.f32.gmra.mxu0 %v54_v46  ;;  %160 = vmatmul.f32.gmra.mxu1 %v62_v47 }
  0xab   :  { %v116_v49 = vpop.f32.mrf.mxu0  ;;  %v140_v50 = vpop.f32.mrf.mxu1 }
  0xac   :  { %v117_v51 = vadd.f32 %v468_v48, %v116_v49  ;;  %v141_v52 = vadd.f32 %v468_v48, %v140_v50 }
  0xae   :  { %v212_v53 = vmax.f32 %v117_v51, 0.0  ;;  %v220_v54 = vmax.f32 %v141_v52, 0.0 }
  0xaf   :  { %v164_v55 = vpop.f32.mrf.mxu2  ;;  %v188_v56 = vpop.f32.mrf.mxu3 }
  0xb0   :  { %244 = vst [vmem:[#allocation7] sm:$0xff] %v212_v53  ;;  %v165_v57 = vadd.f32 %v468_v48, %v164_v55  ;;  %v189_v58 = vadd.f32 %v468_v48, %v188_v56 }
  0xb1   :  { %252 = vst [vmem:[#allocation7 + $0x40] sm:$0xff] %v220_v54 }
  0xb2   :  { %v228_v59 = vmax.f32 %v165_v57, 0.0  ;;  %v236_v60 = vmax.f32 %v189_v58, 0.0 }
  0xb3   :  { %v119_v61 = vpop.f32.mrf.mxu0  ;;  %v143_v62 = vpop.f32.mrf.mxu1 }
  0xb4   :  { %260 = vst [vmem:[#allocation7 + $0x80] sm:$0xff] %v228_v59  ;;  %v120_v63 = vadd.f32 %v468_v48, %v119_v61  ;;  %v144_v0 = vadd.f32 %v468_v48, %v143_v62 }
  0xb5   :  { %268 = vst [vmem:[#allocation7 + $0xc0] sm:$0xff] %v236_v60 }
  0xb6   :  { %v213_v1 = vmax.f32 %v120_v63, 0.0  ;;  %v221_v2 = vmax.f32 %v144_v0, 0.0 }
  0xb7   :  { %v167_v3 = vpop.f32.mrf.mxu2  ;;  %v191_v4 = vpop.f32.mrf.mxu3 }
  0xb8   :  { %245 = vst [vmem:[#allocation7 + $0x8] sm:$0xff] %v213_v1  ;;  %v168_v5 = vadd.f32 %v468_v48, %v167_v3  ;;  %v192_v6 = vadd.f32 %v468_v48, %v191_v4 }
  0xb9   :  { %253 = vst [vmem:[#allocation7 + $0x48] sm:$0xff] %v221_v2 }
  0xba   :  { %v229_v7 = vmax.f32 %v168_v5, 0.0  ;;  %v237_v8 = vmax.f32 %v192_v6, 0.0 }
  0xbb   :  { %v122_v9 = vpop.f32.mrf.mxu0  ;;  %v146_v10 = vpop.f32.mrf.mxu1 }
  0xbc   :  { %261 = vst [vmem:[#allocation7 + $0x88] sm:$0xff] %v229_v7  ;;  %v123_v11 = vadd.f32 %v468_v48, %v122_v9  ;;  %v147_v12 = vadd.f32 %v468_v48, %v146_v10 }
  0xbd   :  { %269 = vst [vmem:[#allocation7 + $0xc8] sm:$0xff] %v237_v8 }
  0xbe   :  { %v214_v13 = vmax.f32 %v123_v11, 0.0  ;;  %v222_v14 = vmax.f32 %v147_v12, 0.0 }
  0xbf   :  { %v170_v15 = vpop.f32.mrf.mxu2  ;;  %v194_v16 = vpop.f32.mrf.mxu3 }
  0xc0   :  { %246 = vst [vmem:[#allocation7 + $0x10] sm:$0xff] %v214_v13  ;;  %v171_v17 = vadd.f32 %v468_v48, %v170_v15  ;;  %v195_v18 = vadd.f32 %v468_v48, %v194_v16 }
  0xc1   :  { %254 = vst [vmem:[#allocation7 + $0x50] sm:$0xff] %v222_v14 }
  0xc2   :  { %v230_v19 = vmax.f32 %v171_v17, 0.0  ;;  %v238_v20 = vmax.f32 %v195_v18, 0.0 }
  0xc3   :  { %v125_v21 = vpop.f32.mrf.mxu0  ;;  %v149_v22 = vpop.f32.mrf.mxu1 }
  0xc4   :  { %262 = vst [vmem:[#allocation7 + $0x90] sm:$0xff] %v230_v19  ;;  %v126_v23 = vadd.f32 %v468_v48, %v125_v21  ;;  %v150_v24 = vadd.f32 %v468_v48, %v149_v22 }
  0xc5   :  { %270 = vst [vmem:[#allocation7 + $0xd0] sm:$0xff] %v238_v20 }
  0xc6   :  { %v215_v25 = vmax.f32 %v126_v23, 0.0  ;;  %v223_v26 = vmax.f32 %v150_v24, 0.0 }
  0xc7   :  { %v173_v27 = vpop.f32.mrf.mxu2  ;;  %v197_v28 = vpop.f32.mrf.mxu3 }
  0xc8   :  { %247 = vst [vmem:[#allocation7 + $0x18] sm:$0xff] %v215_v25  ;;  %v174_v29 = vadd.f32 %v468_v48, %v173_v27  ;;  %v198_v30 = vadd.f32 %v468_v48, %v197_v28 }
  0xc9   :  { %255 = vst [vmem:[#allocation7 + $0x58] sm:$0xff] %v223_v26 }
  0xca   :  { %v231_v31 = vmax.f32 %v174_v29, 0.0  ;;  %v239_v32 = vmax.f32 %v198_v30, 0.0 }
  0xcb   :  { %v128_v33 = vpop.f32.mrf.mxu0  ;;  %v152_v34 = vpop.f32.mrf.mxu1 }
  0xcc   :  { %263 = vst [vmem:[#allocation7 + $0x98] sm:$0xff] %v231_v31  ;;  %v129_v35 = vadd.f32 %v468_v48, %v128_v33  ;;  %v153_v36 = vadd.f32 %v468_v48, %v152_v34 }
  0xcd   :  { %271 = vst [vmem:[#allocation7 + $0xd8] sm:$0xff] %v239_v32 }
  0xce   :  { %v216_v37 = vmax.f32 %v129_v35, 0.0  ;;  %v224_v38 = vmax.f32 %v153_v36, 0.0 }
  0xcf   :  { %v176_v39 = vpop.f32.mrf.mxu2  ;;  %v200_v40 = vpop.f32.mrf.mxu3 }
  0xd0   :  { %248 = vst [vmem:[#allocation7 + $0x20] sm:$0xff] %v216_v37  ;;  %v177_v41 = vadd.f32 %v468_v48, %v176_v39  ;;  %v201_v42 = vadd.f32 %v468_v48, %v200_v40 }
  0xd1   :  { %256 = vst [vmem:[#allocation7 + $0x60] sm:$0xff] %v224_v38 }
  0xd2   :  { %v232_v43 = vmax.f32 %v177_v41, 0.0  ;;  %v240_v44 = vmax.f32 %v201_v42, 0.0 }
  0xd3   :  { %v131_v45 = vpop.f32.mrf.mxu0  ;;  %v155_v46 = vpop.f32.mrf.mxu1 }
  0xd4   :  { %264 = vst [vmem:[#allocation7 + $0xa0] sm:$0xff] %v232_v43  ;;  %v132_v47 = vadd.f32 %v468_v48, %v131_v45  ;;  %v156_v49 = vadd.f32 %v468_v48, %v155_v46 }
  0xd5   :  { %272 = vst [vmem:[#allocation7 + $0xe0] sm:$0xff] %v240_v44 }
  0xd6   :  { %v217_v50 = vmax.f32 %v132_v47, 0.0  ;;  %v225_v51 = vmax.f32 %v156_v49, 0.0 }
  0xd7   :  { %v179_v52 = vpop.f32.mrf.mxu2  ;;  %v203_v53 = vpop.f32.mrf.mxu3 }
  0xd8   :  { %249 = vst [vmem:[#allocation7 + $0x28] sm:$0xff] %v217_v50  ;;  %v180_v54 = vadd.f32 %v468_v48, %v179_v52  ;;  %v204_v55 = vadd.f32 %v468_v48, %v203_v53 }
  0xd9   :  { %257 = vst [vmem:[#allocation7 + $0x68] sm:$0xff] %v225_v51 }
  0xda   :  { %v233_v56 = vmax.f32 %v180_v54, 0.0  ;;  %v241_v57 = vmax.f32 %v204_v55, 0.0 }
  0xdb   :  { %v134_v58 = vpop.f32.mrf.mxu0  ;;  %v158_v59 = vpop.f32.mrf.mxu1 }
  0xdc   :  { %265 = vst [vmem:[#allocation7 + $0xa8] sm:$0xff] %v233_v56  ;;  %v135_v60 = vadd.f32 %v468_v48, %v134_v58  ;;  %v159_v61 = vadd.f32 %v468_v48, %v158_v59 }
  0xdd   :  { %273 = vst [vmem:[#allocation7 + $0xe8] sm:$0xff] %v241_v57 }
  0xde   :  { %v218_v62 = vmax.f32 %v135_v60, 0.0  ;;  %v226_v63 = vmax.f32 %v159_v61, 0.0 }
  0xdf   :  { %v182_v0 = vpop.f32.mrf.mxu2  ;;  %v206_v1 = vpop.f32.mrf.mxu3 }
  0xe0   :  { %250 = vst [vmem:[#allocation7 + $0x30] sm:$0xff] %v218_v62  ;;  %v183_v2 = vadd.f32 %v468_v48, %v182_v0  ;;  %v207_v3 = vadd.f32 %v468_v48, %v206_v1 }
  0xe1   :  { %258 = vst [vmem:[#allocation7 + $0x70] sm:$0xff] %v226_v63 }
  0xe2   :  { %v234_v4 = vmax.f32 %v183_v2, 0.0  ;;  %v242_v5 = vmax.f32 %v207_v3, 0.0 }
  0xe3   :  { %v137_v6 = vpop.f32.mrf.mxu0  ;;  %v161_v7 = vpop.f32.mrf.mxu1 }
  0xe4   :  { %266 = vst [vmem:[#allocation7 + $0xb0] sm:$0xff] %v234_v4  ;;  %v138_v8 = vadd.f32 %v468_v48, %v137_v6  ;;  %v162_v9 = vadd.f32 %v468_v48, %v161_v7 }
  0xe5   :  { %274 = vst [vmem:[#allocation7 + $0xf0] sm:$0xff] %v242_v5 }
  0xe6   :  { %v219_v10 = vmax.f32 %v138_v8, 0.0  ;;  %v227_v11 = vmax.f32 %v162_v9, 0.0 }
  0xe7   :  { %v185_v12 = vpop.f32.mrf.mxu2  ;;  %v209_v13 = vpop.f32.mrf.mxu3 }
  0xe8   :  { %251 = vst [vmem:[#allocation7 + $0x38] sm:$0xff] %v219_v10  ;;  %v186_v14 = vadd.f32 %v468_v48, %v185_v12  ;;  %v210_v15 = vadd.f32 %v468_v48, %v209_v13 }
  0xe9   :  { %259 = vst [vmem:[#allocation7 + $0x78] sm:$0xff] %v227_v11 }
  0xea   :  { %v235_v16 = vmax.f32 %v186_v14, 0.0  ;;  %v243_v17 = vmax.f32 %v210_v15, 0.0 }
  0xec   :  { %267 = vst [vmem:[#allocation7 + $0xb8] sm:$0xff] %v235_v16 }
  0xed   :  { %275 = vst [vmem:[#allocation7 + $0xf8] sm:$0xff] %v243_v17 }
  0xee   :  { %288 = dma.vmem_to_hbm [thread:$0]  %s281_s24, 4096, %s283_s27, [#allocation4], %s429_s20, %s429_s20, %s430_s21  }
  0xef   :  { %426 = dma.done.wait [#allocation4], 4096  }
  0xf0   :  { %427 = vsyncadd [#allocation4], 4294963200 }
  0xf1   :  { %293 = vsyncpa [#allocation3], 1 }
  0xf2   :  { %294 = vsyncpa [#allocation6], 1 }
  0xf3   :  { %295 = vsyncpa [#allocation4], 1 }

</bundles_post_ra>
